<compile_context>
chip_gen: v7x
topology: tpu7x:2x2x1
jax: 0.10.0
libtpu: 0.0.40
codegen_flags: <defaults>
</compile_context>

<pallas_src>
import functools
import math

import numpy as np
import jax
import jax.numpy as jnp
from jax import lax
from jax.experimental import pallas as pl
from jax.experimental.pallas import tpu as pltpu


# --------------------------------------------------------------------------- #
# Kernel
# --------------------------------------------------------------------------- #
def adapter_kernel(x_ref, w1_ref, b1_ref, w2_ref, b2_ref, w3_ref, b3_ref,
                   mask_ref, o_ref, *, matmul_dtype):
    # x arrives in its native HBM dtype; cast once for the MXU.
    x = x_ref[...].astype(matmul_dtype)

    # Linear 1 + ReLU (Dropout -> identity at inference)
    h1 = jnp.dot(x, w1_ref[...], preferred_element_type=jnp.float32) + b1_ref[...]
    h1 = jnp.maximum(h1, 0.0)

    # Linear 2 + ReLU
    h2 = jnp.dot(h1.astype(matmul_dtype), w2_ref[...],
                 preferred_element_type=jnp.float32) + b2_ref[...]
    h2 = jnp.maximum(h2, 0.0)

    # Output linear
    y = jnp.dot(h2.astype(matmul_dtype), w3_ref[...],
                preferred_element_type=jnp.float32) + b3_ref[...]

    # Per-logical-row sum of squares via a single bf16 block-mask MXU pass
    # (mask is block-diagonal 0/1 -> exact in bf16; accumulate in f32).
    yy = (y * y).astype(matmul_dtype)
    sumsq = jnp.dot(yy, mask_ref[...], preferred_element_type=jnp.float32)
    inv = lax.rsqrt(jnp.maximum(sumsq, 1e-24))       # == 1/max(||y||, 1e-12)
    o_ref[...] = (y * inv).astype(o_ref.dtype)


# --------------------------------------------------------------------------- #
# Packing (done ONCE per parameter set, reused across calls)
# --------------------------------------------------------------------------- #
def _round_up(x, m):
    return ((x + m - 1) // m) * m


def _pack_factor(d_in, d_out):
    """Smallest P s.t. P*d_in and P*d_out are multiples of 128 (lane-dense I/O)."""
    p_in = 128 // math.gcd(d_in, 128)
    p_out = 128 // math.gcd(d_out, 128)
    return p_in * p_out // math.gcd(p_in, p_out)


def pack_params(params, *, matmul_dtype=jnp.bfloat16):
    """Pre-pack (kron block-diagonal) weights, tiled biases and norm mask.

    Call once and reuse the result: it avoids re-materializing the packed
    weights on every adapter invocation and halves their VMEM residency (bf16).
    """
    w1, b1, w2, b2, w3, b3 = params
    d_in, d_h1 = w1.shape
    d_h2, d_out = w3.shape
    pack = _pack_factor(d_in, d_out)

    def pack_linear(w, b):
        w = jnp.asarray(w, jnp.float32)
        b = jnp.asarray(b, jnp.float32)
        if pack > 1:
            w = jnp.kron(jnp.eye(pack, dtype=jnp.float32), w)
            b = jnp.tile(b, pack)
        return w.astype(matmul_dtype), b.reshape(1, -1)     # biases stay f32

    w1p, b1p = pack_linear(w1, b1)
    w2p, b2p = pack_linear(w2, b2)
    w3p, b3p = pack_linear(w3, b3)
    mask = jnp.kron(jnp.eye(pack, dtype=jnp.float32),
                    jnp.ones((d_out, d_out), jnp.float32)).astype(matmul_dtype)

    return {
        "w1": w1p, "b1": b1p, "w2": w2p, "b2": b2p, "w3": w3p, "b3": b3p,
        "mask": mask, "pack": pack,
        "dims": (d_in, d_h1, d_h2, d_out),
        "matmul_dtype": matmul_dtype,
    }


# --------------------------------------------------------------------------- #
# Wrapper
# --------------------------------------------------------------------------- #
_VMEM_LIMIT = 48 * 1024 * 1024        # safe on v7x (64 MiB physical), raises v5e/v6e default


def _default_tile_rows():
    """Generation-tuned default: bigger tiles where VMEM allows (v5e/v6e)."""
    try:
        info = pltpu.get_tpu_info()
        vmem = getattr(info, "vmem_capacity_bytes", None)
        if vmem is not None and vmem >= (100 << 20):
            return 16384              # v5e / v6e: 128 MiB VMEM
    except Exception:
        pass
    return 8192                       # v7x (64 MiB VMEM) and fallback


def feature_adapter(features, packed, *, tile_rows=None, out_dtype=None):
    """features: [B, N, d_in] -> [B, N, d_out] (eval-mode FeatureAdapter).

    Prefer feeding bf16 features directly (producer-side) — the kernel is
    HBM-bound and halving I/O bytes is worth up to ~2x; do NOT add a
    wrapper-side astype, which would re-add a full HBM pass.
    """
    B, N, d_in_f = features.shape
    d_in, d_h1, d_h2, d_out = packed["dims"]
    assert d_in_f == d_in
    pack = packed["pack"]
    matmul_dtype = packed["matmul_dtype"]
    out_dtype = features.dtype if out_dtype is None else out_dtype

    d_in_p, d_h1_p, d_h2_p, d_out_p = (pack * d_in, pack * d_h1,
                                       pack * d_h2, pack * d_out)

    # Fold `pack` consecutive logical rows into one 128-lane row (pure reshape).
    SUB = 16
    M = B * N
    Mp = -(-M // pack)
    pad_rows = Mp * pack - M                     # < pack; 0 in the common case
    x2d = features.reshape(M, d_in)
    if pad_rows:
        x2d = jnp.pad(x2d, ((0, pad_rows), (0, 0)))
    x_packed = x2d.reshape(Mp, d_in_p)

    in_item = jnp.dtype(features.dtype).itemsize
    out_item = jnp.dtype(out_dtype).itemsize

    # Row-tile size: large (amortize ~0.35 us/step), VMEM-aware, and capped so
    # big-enough inputs still give >= 4 grid steps (>= 2 per v7x TensorCore).
    if tile_rows is None:
        tile_rows = _default_tile_rows()
    tile_p_req = max(SUB, (tile_rows // pack) // SUB * SUB)

    weight_bytes = sum(int(a.size) * jnp.dtype(a.dtype).itemsize
                       for a in (packed["w1"], packed["b1"], packed["w2"],
                                 packed["b2"], packed["w3"], packed["b3"],
                                 packed["mask"]))
    per_row_bytes = (2 * d_in_p * in_item           # input, double-buffered
                     + 2 * d_out_p * out_item       # output, double-buffered
                     + 4 * (d_h1_p + d_h2_p + 2 * d_out_p)     # f32 intermediates
                     + 2 * (d_in_p + d_h1_p + d_h2_p + d_out_p))  # bf16 casts
    budget = _VMEM_LIMIT - 2 * weight_bytes - (4 << 20)
    tile_p_vmem = max(SUB, (budget // per_row_bytes) // SUB * SUB)
    tile_p_steps = _round_up(-(-Mp // 4), SUB)
    tile_p = max(SUB, min(tile_p_req, tile_p_vmem, tile_p_steps))

    grid = (pl.cdiv(Mp, tile_p),)                 # ragged last block: Pallas clips

    flops = 2 * M * (d_in * d_h1 + d_h1 * d_h2 + d_h2 * d_out + d_out * d_out)
    bytes_accessed = M * d_in * in_item + M * d_out * out_item + weight_bytes
    cost = pl.CostEstimate(flops=int(flops),
                           transcendentals=int(M * d_out),
                           bytes_accessed=int(bytes_accessed))

    kernel = functools.partial(adapter_kernel, matmul_dtype=matmul_dtype)
    out_packed = pl.pallas_call(
        kernel,
        out_shape=jax.ShapeDtypeStruct((Mp, d_out_p), out_dtype),
        grid_spec=pltpu.PrefetchScalarGridSpec(
            num_scalar_prefetch=0,
            grid=grid,
            in_specs=[
                pl.BlockSpec((tile_p, d_in_p), lambda i: (i, 0)),    # x rows tiled
                pl.BlockSpec((d_in_p, d_h1_p), lambda i: (0, 0)),    # W1 (resident)
                pl.BlockSpec((1, d_h1_p), lambda i: (0, 0)),         # b1
                pl.BlockSpec((d_h1_p, d_h2_p), lambda i: (0, 0)),    # W2
                pl.BlockSpec((1, d_h2_p), lambda i: (0, 0)),         # b2
                pl.BlockSpec((d_h2_p, d_out_p), lambda i: (0, 0)),   # W3
                pl.BlockSpec((1, d_out_p), lambda i: (0, 0)),        # b3
                pl.BlockSpec((d_out_p, d_out_p), lambda i: (0, 0)),  # norm mask
            ],
            out_specs=pl.BlockSpec((tile_p, d_out_p), lambda i: (i, 0)),
        ),
        compiler_params=pltpu.CompilerParams(
            dimension_semantics=("parallel",),
            vmem_limit_bytes=_VMEM_LIMIT,
        ),
        cost_estimate=cost,
    )(x_packed, packed["w1"], packed["b1"], packed["w2"], packed["b2"],
      packed["w3"], packed["b3"], packed["mask"])

    out = out_packed.reshape(Mp * pack, d_out)    # contiguous reshape (free)
    if pad_rows:
        out = out[:M]
    return out.reshape(B, N, d_out)


def feature_adapter_raw(features, params, **kwargs):
    """Convenience path: packs params on every call (prefer pack_params once)."""
    return feature_adapter(features, pack_params(params), **kwargs)


# --------------------------------------------------------------------------- #
# Deterministic init + self-test
# --------------------------------------------------------------------------- #
def init_params(key, input_dim, hidden_dims, output_dim):
    """PyTorch-Linear-style uniform init for the 3 linear layers."""
    dims = [input_dim] + list(hidden_dims) + [output_dim]
    params = []
    for i in range(len(dims) - 1):
        fan_in, fan_out = dims[i], dims[i + 1]
        key, kw, kb = jax.random.split(key, 3)
        bound = 1.0 / (fan_in ** 0.5)
        w = jax.random.uniform(kw, (fan_in, fan_out), jnp.float32, -bound, bound)
        b = jax.random.uniform(kb, (fan_out,), jnp.float32, -bound, bound)
        params.extend([w, b])
    return tuple(params)


if __name__ == "__main__":
    # Small shapes consistent with the module: [B, N, input_dim]
    B, N = 2, 64
    input_dim, hidden_dims, output_dim = 64, [32, 64], 64

    key = jax.random.PRNGKey(0)
    key, kx = jax.random.split(key)
    features = jax.random.normal(kx, (B, N, input_dim), dtype=jnp.float32)
    params = init_params(key, input_dim, hidden_dims, output_dim)

    # High-precision host reference (eval-mode dropout = identity).
    w1, b1, w2, b2, w3, b3 = [np.asarray(p, dtype=np.float64) for p in params]
    xnp = np.asarray(features, dtype=np.float64).reshape(B * N, input_dim)
    h = np.maximum(xnp @ w1 + b1, 0.0)
    h = np.maximum(h @ w2 + b2, 0.0)
    y = h @ w3 + b3
    ref = (y / np.maximum(np.linalg.norm(y, axis=-1, keepdims=True), 1e-12)
           ).reshape(B, N, output_dim)

    packed = pack_params(params)   # packed ONCE, reused across calls

    # 1) Default path: native f32 HBM I/O, bf16 MXU operands, f32 accum/norm.
    out = jax.block_until_ready(feature_adapter(features, packed))
    assert out.shape == (B, N, output_dim)
    norms = np.linalg.norm(np.asarray(out, dtype=np.float64), axis=-1)
    assert np.allclose(norms, 1.0, atol=1e-2), "unit-norm check failed"
    err = float(np.max(np.abs(np.asarray(out, dtype=np.float64) - ref)))
    assert err < 3e-2, f"max abs err vs reference too large: {err}"

    # 2) bf16 HBM I/O (preferred when the producer already emits bf16).
    out_bf16 = jax.block_until_ready(
        feature_adapter(features.astype(jnp.bfloat16), packed))
    assert out_bf16.shape == (B, N, output_dim)
    assert out_bf16.dtype == jnp.bfloat16
    out_bf16_f64 = np.asarray(out_bf16, dtype=np.float64)
    assert np.all(np.isfinite(out_bf16_f64))
    assert np.allclose(np.linalg.norm(out_bf16_f64, axis=-1), 1.0, atol=3e-2)
    assert float(np.max(np.abs(out_bf16_f64 - ref))) < 8e-2

    print("KERNEL_OK")
</pallas_src>

<mosaic_0001>
module attributes {stable_mosaic.version = 11 : i64} {
  func.func @adapter_kernel(%arg0: i32, %arg1: memref<16x128xf32, #tpu.memory_space<vmem>>, %arg2: memref<128x64xbf16, #tpu.memory_space<vmem>>, %arg3: memref<1x64xf32, #tpu.memory_space<vmem>>, %arg4: memref<64x128xbf16, #tpu.memory_space<vmem>>, %arg5: memref<1x128xf32, #tpu.memory_space<vmem>>, %arg6: memref<128x128xbf16, #tpu.memory_space<vmem>>, %arg7: memref<1x128xf32, #tpu.memory_space<vmem>>, %arg8: memref<128x128xbf16, #tpu.memory_space<vmem>>, %arg9: memref<16x128xf32, #tpu.memory_space<vmem>>) attributes {dimension_semantics = [#tpu.dimension_semantics<parallel>], iteration_bounds = array<i64: 4>, scalar_prefetch = 0 : i64, scratch_operands = 0 : i64, tpu.core_type = #tpu.core_type<tc>, window_params = [{transform_indices = @transform_0, window_bounds = array<i64: 16, 128>}, {pipeline_mode = #tpu.pipeline_mode<synchronous>, transform_indices = @transform_1, window_bounds = array<i64: 128, 64>}, {pipeline_mode = #tpu.pipeline_mode<synchronous>, transform_indices = @transform_2, window_bounds = array<i64: 1, 64>}, {pipeline_mode = #tpu.pipeline_mode<synchronous>, transform_indices = @transform_3, window_bounds = array<i64: 64, 128>}, {pipeline_mode = #tpu.pipeline_mode<synchronous>, transform_indices = @transform_4, window_bounds = array<i64: 1, 128>}, {pipeline_mode = #tpu.pipeline_mode<synchronous>, transform_indices = @transform_5, window_bounds = array<i64: 128, 128>}, {pipeline_mode = #tpu.pipeline_mode<synchronous>, transform_indices = @transform_6, window_bounds = array<i64: 1, 128>}, {pipeline_mode = #tpu.pipeline_mode<synchronous>, transform_indices = @transform_7, window_bounds = array<i64: 128, 128>}, {transform_indices = @transform_8, window_bounds = array<i64: 16, 128>}]} {
    %c0 = arith.constant 0 : index
    %c0_0 = arith.constant 0 : index
    %0 = vector.load %arg1[%c0, %c0_0] : memref<16x128xf32, #tpu.memory_space<vmem>>, vector<16x128xf32>
    %1 = arith.truncf %0 : vector<16x128xf32> to vector<16x128xbf16>
    %c0_1 = arith.constant 0 : index
    %c0_2 = arith.constant 0 : index
    %2 = vector.load %arg2[%c0_1, %c0_2] : memref<128x64xbf16, #tpu.memory_space<vmem>>, vector<128x64xbf16>
    %cst = arith.constant dense<0.000000e+00> : vector<16x64xf32>
    %3 = tpu.matmul %1, %2, %cst {dimension_numbers = #tpu.dot_dimension_numbers<[1], [0], [0], [1], [0, 0, 1, 1], [], []>} : vector<16x128xbf16>, vector<128x64xbf16>, vector<16x64xf32> -> vector<16x64xf32>
    %c0_3 = arith.constant 0 : index
    %c0_4 = arith.constant 0 : index
    %4 = vector.load %arg3[%c0_3, %c0_4] : memref<1x64xf32, #tpu.memory_space<vmem>>, vector<1x64xf32>
    %5 = vector.broadcast %4 : vector<1x64xf32> to vector<16x64xf32>
    %6 = arith.addf %3, %5 : vector<16x64xf32>
    %cst_5 = arith.constant 0.000000e+00 : f32
    %7 = vector.broadcast %cst_5 : f32 to vector<16x64xf32>
    %8 = arith.maximumf %6, %7 : vector<16x64xf32>
    %9 = arith.truncf %8 : vector<16x64xf32> to vector<16x64xbf16>
    %c0_6 = arith.constant 0 : index
    %c0_7 = arith.constant 0 : index
    %10 = vector.load %arg4[%c0_6, %c0_7] : memref<64x128xbf16, #tpu.memory_space<vmem>>, vector<64x128xbf16>
    %cst_8 = arith.constant dense<0.000000e+00> : vector<16x128xf32>
    %11 = tpu.matmul %9, %10, %cst_8 {dimension_numbers = #tpu.dot_dimension_numbers<[1], [0], [0], [1], [0, 0, 1, 1], [], []>} : vector<16x64xbf16>, vector<64x128xbf16>, vector<16x128xf32> -> vector<16x128xf32>
    %c0_9 = arith.constant 0 : index
    %c0_10 = arith.constant 0 : index
    %12 = vector.load %arg5[%c0_9, %c0_10] : memref<1x128xf32, #tpu.memory_space<vmem>>, vector<1x128xf32>
    %13 = vector.broadcast %12 : vector<1x128xf32> to vector<16x128xf32>
    %14 = arith.addf %11, %13 : vector<16x128xf32>
    %cst_11 = arith.constant 0.000000e+00 : f32
    %15 = vector.broadcast %cst_11 : f32 to vector<16x128xf32>
    %16 = arith.maximumf %14, %15 : vector<16x128xf32>
    %17 = arith.truncf %16 : vector<16x128xf32> to vector<16x128xbf16>
    %c0_12 = arith.constant 0 : index
    %c0_13 = arith.constant 0 : index
    %18 = vector.load %arg6[%c0_12, %c0_13] : memref<128x128xbf16, #tpu.memory_space<vmem>>, vector<128x128xbf16>
    %cst_14 = arith.constant dense<0.000000e+00> : vector<16x128xf32>
    %19 = tpu.matmul %17, %18, %cst_14 {dimension_numbers = #tpu.dot_dimension_numbers<[1], [0], [0], [1], [0, 0, 1, 1], [], []>} : vector<16x128xbf16>, vector<128x128xbf16>, vector<16x128xf32> -> vector<16x128xf32>
    %c0_15 = arith.constant 0 : index
    %c0_16 = arith.constant 0 : index
    %20 = vector.load %arg7[%c0_15, %c0_16] : memref<1x128xf32, #tpu.memory_space<vmem>>, vector<1x128xf32>
    %21 = vector.broadcast %20 : vector<1x128xf32> to vector<16x128xf32>
    %22 = arith.addf %19, %21 : vector<16x128xf32>
    %23 = arith.mulf %22, %22 : vector<16x128xf32>
    %24 = arith.truncf %23 : vector<16x128xf32> to vector<16x128xbf16>
    %c0_17 = arith.constant 0 : index
    %c0_18 = arith.constant 0 : index
    %25 = vector.load %arg8[%c0_17, %c0_18] : memref<128x128xbf16, #tpu.memory_space<vmem>>, vector<128x128xbf16>
    %cst_19 = arith.constant dense<0.000000e+00> : vector<16x128xf32>
    %26 = tpu.matmul %24, %25, %cst_19 {dimension_numbers = #tpu.dot_dimension_numbers<[1], [0], [0], [1], [0, 0, 1, 1], [], []>} : vector<16x128xbf16>, vector<128x128xbf16>, vector<16x128xf32> -> vector<16x128xf32>
    %cst_20 = arith.constant 1.000000e-24 : f32
    %27 = vector.broadcast %cst_20 : f32 to vector<16x128xf32>
    %28 = arith.maximumf %26, %27 : vector<16x128xf32>
    %29 = math.rsqrt %28 : vector<16x128xf32>
    %30 = arith.mulf %22, %29 : vector<16x128xf32>
    %c0_21 = arith.constant 0 : index
    %c0_22 = arith.constant 0 : index
    %31 = vector.load %arg9[%c0_21, %c0_22] : memref<16x128xf32, #tpu.memory_space<vmem>>, vector<16x128xf32>
    tpu.vector_store %arg9[%c0_21, %c0_22], %30 {strides = array<i32>} : memref<16x128xf32, #tpu.memory_space<vmem>>, vector<16x128xf32>,
    return
  }
  func.func @transform_0(%arg0: i32) -> (i32, i32) {
    %c0_i32 = arith.constant 0 : i32
    %c0_i32_0 = arith.constant 0 : i32
    return %arg0, %c0_i32 : i32, i32
  }
  func.func @transform_1(%arg0: i32) -> (i32, i32) {
    %c0_i32 = arith.constant 0 : i32
    %c0_i32_0 = arith.constant 0 : i32
    %c0_i32_1 = arith.constant 0 : i32
    return %c0_i32, %c0_i32_0 : i32, i32
  }
  func.func @transform_2(%arg0: i32) -> (i32, i32) {
    %c0_i32 = arith.constant 0 : i32
    %c0_i32_0 = arith.constant 0 : i32
    %c0_i32_1 = arith.constant 0 : i32
    return %c0_i32, %c0_i32_0 : i32, i32
  }
  func.func @transform_3(%arg0: i32) -> (i32, i32) {
    %c0_i32 = arith.constant 0 : i32
    %c0_i32_0 = arith.constant 0 : i32
    %c0_i32_1 = arith.constant 0 : i32
    return %c0_i32, %c0_i32_0 : i32, i32
  }
  func.func @transform_4(%arg0: i32) -> (i32, i32) {
    %c0_i32 = arith.constant 0 : i32
    %c0_i32_0 = arith.constant 0 : i32
    %c0_i32_1 = arith.constant 0 : i32
    return %c0_i32, %c0_i32_0 : i32, i32
  }
  func.func @transform_5(%arg0: i32) -> (i32, i32) {
    %c0_i32 = arith.constant 0 : i32
    %c0_i32_0 = arith.constant 0 : i32
    %c0_i32_1 = arith.constant 0 : i32
    return %c0_i32, %c0_i32_0 : i32, i32
  }
  func.func @transform_6(%arg0: i32) -> (i32, i32) {
    %c0_i32 = arith.constant 0 : i32
    %c0_i32_0 = arith.constant 0 : i32
    %c0_i32_1 = arith.constant 0 : i32
    return %c0_i32, %c0_i32_0 : i32, i32
  }
  func.func @transform_7(%arg0: i32) -> (i32, i32) {
    %c0_i32 = arith.constant 0 : i32
    %c0_i32_0 = arith.constant 0 : i32
    %c0_i32_1 = arith.constant 0 : i32
    return %c0_i32, %c0_i32_0 : i32, i32
  }
  func.func @transform_8(%arg0: i32) -> (i32, i32) {
    %c0_i32 = arith.constant 0 : i32
    %c0_i32_0 = arith.constant 0 : i32
    return %arg0, %c0_i32 : i32, i32
  }
}

</mosaic_0001>

<bundles_post_ra>
// kernel: tpu_custom_call.1
= control target key start
LH: loop header
LB: loop body
LE: loop exit
PB: predicated region body
PF: predicated region fallthrough
CT: control target
= control target key end

     0   :  { %13 = vsyncpa [#allocation3], 0  ;;  %s1557_s0 = inlined_call_operand.vmem [shape: f32[64,128], index: 0, kind: input, shape index: {}]   ;;  %s1558_s1 = inlined_call_operand.vmem [shape: bf16[128,64], index: 1, kind: input, shape index: {}]   ;;  %s1559_s2 = inlined_call_operand.vmem [shape: f32[1,64], index: 2, kind: input, shape index: {}]   ;;  %s1560_s3 = inlined_call_operand.vmem [shape: bf16[64,128], index: 3, kind: input, shape index: {}]   ;;  %s1561_s4 = inlined_call_operand.vmem [shape: f32[1,128], index: 4, kind: input, shape index: {}]   ;;  %s1562_s5 = inlined_call_operand.hbm [shape: bf16[128,128], index: 5, kind: input, shape index: {}]   ;;  %s1563_s6 = inlined_call_operand.vmem [shape: f32[1,128], index: 6, kind: input, shape index: {}]   ;;  %s1564_s7 = inlined_call_operand.hbm [shape: bf16[128,128], index: 7, kind: input, shape index: {}]   ;;  %s1565_s8 = inlined_call_operand.hbm [shape: f32[64,128], index: 8, kind: output, shape index: {}]  }
   0x1   :  { %14 = vsyncpa [#allocation6], 0 }
   0x2   :  { %15 = vsyncpa [#allocation4], 0 }
   0x3   :  { %17 = vsyncpa [#allocation4 + $0x1], 0  ;;  %s1302_s27 = smov 0   ;;  %s1304_s28 = smov 0  }
   0x4   :  { %s1306_s29 = smov 0   ;;  %s1308_s30 = smov 0  }
   0x5 LB: > { %1570 = sst [smem:[#allocation11_spill]] %s1242_s29  ;;  %s1323_s9 = sadd.s32 4294967295, %s1246_s30   ;;  %s1246_s30 = sphi %s1308_s30, %s1587_s30   ;;  %s1242_s29 = sphi %s1306_s29, %s1584_s29   ;;  %s1238_s28 = sphi %s1304_s28, %s1586_s28   ;;  %s1234_s27 = sphi %s1302_s27, %s1585_s27  }
   0x6   : > { %s869_s10 = sadd.s32 4294967294, %s1246_s30   ;;  %s1327_s11 = sadd.s32 1, %s1246_s30  }
   0x7   : > { %s203_s12 = sadd.s32 1, %s1242_s29  ;;  %s200_s13 = ssub.s32 %s1246_s30, %s1327_s11 }
   0x8   : > { %p213_p0 = scmp.ne.s32.totalorder %s1242_s29, %s1238_s28  ;;  %p201_p1 = scmp.eq.s32.totalorder %s200_s13, 0 }
   0x9   : > { %p214_p2 = scmp.eq.s32.totalorder %s1323_s9, 3  ;;  %p219_p3 = scmp.ne.s32.totalorder %s1238_s28, %s1234_s27 }
   0xa   : > { %p220_p4 = scmp.eq.s32.totalorder %s869_s10, 3  ;;  %p870_p7 = scmp.ge.s32.totalorder %s1246_s30, 1 }
   0xb   : > { %s1338_s14 = scalar_select %p201_p1, %s1242_s29, %s203_s12  }
   0xc   : > { %p1340_p5 = por %p214_p2, %p213_p0  ;;  %p1344_p6 = por %p220_p4, %p219_p3 }
   0xd   : > { %1571 = sst [smem:[#allocation12_spill]] %s1338_s14  ;;  %p227_p8 = scmp.lt.s32.totalorder %s1246_s30, 5 }
   0xe   : > { %s1572_s15 = scalar_select %p1340_p5, 1, 0 }
   0xf   : > { %s1573_s16 = scalar_select %p1344_p6, 1, 0 }
  0x10   : > { %p1566_p9 = scmp.eq.s32.totalorder %s1323_s9, 0  ;;  %p1351_p10 = pnand %p870_p7, %p227_p8 }
  0x11   : > { %s1248_s18 = smov [#allocation2]   ;;  %s1249_s21 = smov [#allocation5]  }
  0x12   : > { %s1574_s17 = scalar_select %p1351_p10, 1, 0 }
  0x13   : > { %s251_s19 = sshll.u32 %s1248_s18, 4  ;;  %p1032_p11 = pneg %p1351_p10  ;;  %s252_s19 = int_to_ptr.vmem [resolvable:$true] %s251_s19 }
  0x14   : > { %s267_s22 = sshll.u32 %s1249_s21, 4  ;;  %s1120_s25 = scalar_lea.hbm %s1562_s5, 1024  ;;  %s1363_s22 = int_to_ptr.vmem [resolvable:$true] %s267_s22 }
  0x15   : > { %p1359_p12 = pnand %p1566_p9, %p1032_p11  ;;  %p1121_p13 = scmp.ne.s32.totalorder %s1562_s5, %s1120_s25 }
  0x16   : > { %p1127_p3 = scmp.lt.u32.totalorder %s1120_s25, %s1562_s5 }
  0x17   : > { %p1122_p0 = pneg %p1359_p12 }
  0x19   : > { %p1123_p1 = pnand %p1122_p0, %p1121_p13 }
  0x1b   : > { %p1124_p2 = pneg %p1123_p1 }
  0x1d   : > { %p1129_p4 = pnand %p1127_p3, %p1124_p2 }
  0x1f   : > { %1132 = shalt.err (!%p1129_p4)
}
  0x20   : > { %s1133_s18 = scalar_lea.vmem %s252_s19, 1024  ;;  %p1141_p9 = scmp.lt.s32.totalorder %s252_s19, %s252_s19 }
  0x21   : > { %p1134_p7 = scmp.ne.s32.totalorder %s252_s19, %s1133_s18  ;;  %p1142_p6 = scmp.lt.s32.totalorder %s1133_s18, %s1133_s18 }
  0x23   : > { %p1136_p8 = pnand %p1134_p7, %p1122_p0  ;;  %p1143_p5 = por %p1142_p6, %p1141_p9 }
  0x25   : > { %p1137_p11 = pneg %p1136_p8 }
  0x27   : > { %p1144_p10 = pnand %p1143_p5, %p1137_p11 }
  0x29   : > { %1147 = shalt.err (!%p1144_p10)
}
  0x2a   : > { %s1250_s21 = smov 64   ;;  %s1251_s23 = smov 4  }
  0x2b   : > { %1035 = dma.hbm_to_vmem [thread:$0]  (!%p1359_p12), %s1562_s5, 1024, %s252_s19, [#allocation3], %s1250_s21, %s1250_s21, %s1251_s23  }
  0x2c   : > { %s1148_s12 = scalar_lea.hbm %s1564_s7, 1024 }
  0x2d   : > { %p1149_p13 = scmp.ne.s32.totalorder %s1564_s7, %s1148_s12  ;;  %p1155_p9 = scmp.lt.u32.totalorder %s1148_s12, %s1564_s7 }
  0x2f   : > { %p1151_p5 = pnand %p1149_p13, %p1122_p0 }
  0x31   : > { %p1152_p6 = pneg %p1151_p5 }
  0x33   : > { %p1157_p10 = pnand %p1155_p9, %p1152_p6 }
  0x35   : > { %1160 = shalt.err (!%p1157_p10)
}
  0x36   : > { %s1161_s19 = scalar_lea.vmem %s1363_s22, 1024  ;;  %p1169_p4 = scmp.lt.s32.totalorder %s1363_s22, %s1363_s22 }
  0x37   : > { %p1162_p1 = scmp.ne.s32.totalorder %s1363_s22, %s1161_s19  ;;  %p1170_p7 = scmp.lt.s32.totalorder %s1161_s19, %s1161_s19 }
  0x39   : > { %p1164_p2 = pnand %p1162_p1, %p1122_p0  ;;  %p1171_p8 = por %p1170_p7, %p1169_p4 }
  0x3b   : > { %p1165_p3 = pneg %p1164_p2 }
  0x3d   : > { %p1172_p11 = pnand %p1171_p8, %p1165_p3 }
  0x3f   : > { %1175 = shalt.err (!%p1172_p11)
}
  0x40   : > { %1038 = dma.hbm_to_vmem [thread:$0]  (!%p1359_p12), %s1564_s7, 1024, %s1363_s22, [#allocation6], %s1250_s21, %s1250_s21, %s1251_s23  }
  0x41   : > { %p1576_p13 = scmp.ne.s32.totalorder %s1574_s17, 0 }
  0x42   : > { %p1577_p5 = scmp.eq.s32.totalorder (!%p1576_p13), %s1323_s9, 0 }
  0x43   : > { %292 = sbr.rel (%p1576_p13) target bundleno = 1017 (0x3f9), region = 52 }
  0x4a   : > { %1221 = dma.done.wait (%p1577_p5), [#allocation3], 1024   ;;  %p1578_p0 = pmov %p1577_p5 }
  0x4c   : > { %1223 = vsyncadd (%p1578_p0), [#allocation3], 4294966272  ;;  %p1579_p6 = pmov %p1578_p0 }
  0x4d   : > { %p1580_p9 = pmov %p1578_p0 }
  0x4e   : > { %1225 = dma.done.wait (%p1579_p6), [#allocation6], 1024  }
  0x4f   : > { %1227 = vsyncadd (%p1580_p9), [#allocation6], 4294966272  ;;  %v1252_v0 = vmov 0.0   ;;  %vm1253_vm0 = vmmov 0   ;;  %s878_s17 = sshll.u32 %s1323_s9, 1  ;;  %v1088_v1 = vld [vmem:[%s1558_s1] sm:$0xff]  }
  0x50   : > { %950 = vmatprep.subr.bf16.mxu0 %v1252_v0  ;;  %966 = vmatprep.mubr.msk.bf16.mxu0 %vm1253_vm0, %v1252_v0  ;;  %v1089_v2 = vld [vmem:[%s1558_s1 + $0x8] sm:$0xff]   ;;  %p331_p12 = scmp.lt.s32.totalorder %s878_s17, 7  ;;  %v1090_v3 = vld [vmem:[%s1558_s1 + $0x10] sm:$0xff]   ;;  %v1096_v4 = vld [vmem:[%s1560_s3] sm:$0xff]   ;;  %vm495_vm1 = vcmask 523264   ;;  %s327_s24 = sand.u32 1, %s1238_s28  }
  0x51   : > { %970 = vmatprep.subr.bf16.mxu1 %v1252_v0  ;;  %978 = vmatprep.mubr.msk.bf16.mxu1 %vm1253_vm0, %v1252_v0  ;;  %v1091_v5 = vld [vmem:[%s1558_s1 + $0x18] sm:$0xff]   ;;  %v1097_v6 = vld [vmem:[%s1560_s3 + $0x8] sm:$0xff]   ;;  %v1092_v7 = vld [vmem:[%s1558_s1 + $0x20] sm:$0xff]   ;;  %s877_s25 = sshll.u32 %s327_s24, 4  ;;  %s1516_s29 = scalar_lea.sflag [#allocation4], %s327_s24 }
  0x52   : > { %951 = vmatpush3.bf16.msra.mxu0 %v1088_v1  ;;  %s1589_s17 = smov (!%p331_p12, %s878_s17), 7  ;;  %971 = vmatpush3.bf16.msra.mxu1 %v1096_v4  ;;  %v1093_v8 = vld [vmem:[%s1558_s1 + $0x28] sm:$0xff]   ;;  %v1094_v9 = vld [vmem:[%s1558_s1 + $0x30] sm:$0xff]   ;;  %v1095_v10 = vld [vmem:[%s1558_s1 + $0x38] sm:$0xff]   ;;  %s329_s10 = scalar_lea.vmem [#allocation7], %s877_s25 }
  0x53   : > { %952 = vmatprep.subr.bf16.mxu0 %v1252_v0  ;;  %s879_s18 = sshll.u32 %s1589_s17, 3  ;;  %972 = vmatprep.subr.bf16.mxu1 %v1252_v0  ;;  %v1098_v14 = vld [vmem:[%s1560_s3 + $0x10] sm:$0xff]   ;;  %v1099_v15 = vld [vmem:[%s1560_s3 + $0x18] sm:$0xff]   ;;  %v880_v16 = vld [vmem:[%s1559_s2] ss:$0 sm:$0xff]  ;;  %s785_s12 = sshll.u32 %s329_s10, 4  ;;  %s1514_s12 = int_to_ptr.vmem [resolvable:$true] %s785_s12 }
  0x54   : > { %s334_s26 = scalar_lea.vmem %s1557_s0, %s879_s18  ;;  %v1100_v25 = vld [vmem:[#allocation2] sm:$0xff]   ;;  %v1101_v27 = vld [vmem:[#allocation2 + $0x8] sm:$0xff]   ;;  %v1102_v28 = vld [vmem:[#allocation2 + $0x10] sm:$0xff]   ;;  %p1581_p1 = scmp.ne.s32.totalorder %s1572_s15, 0 }
  0x55   : > { %v338_v11 = vld [vmem:[%s334_s26] sm:$0xff]  ;;  %v339_v12 = vld [vmem:[%s334_s26 + $0x8] sm:$0xff]  ;;  %v1103_v29 = vld [vmem:[#allocation2 + $0x18] sm:$0xff]   ;;  %s917_s26 = sshll.u32 %s1323_s9, 8  ;;  %s1176_s9 = scalar_lea.vmem %s1514_s12, 256 }
  0x56   : > { %953 = vmatpush3.bf16.msra.mxu0 %v1089_v2  ;;  %973 = vmatpush3.bf16.msra.mxu1 %v1097_v6  ;;  %v340_v13 = vpack.c.bf16 %v339_v12, %v338_v11  ;;  %v1104_v30 = vld [vmem:[#allocation2 + $0x20] sm:$0xff]   ;;  %v1105_v31 = vld [vmem:[#allocation2 + $0x28] sm:$0xff]   ;;  %v1106_v32 = vld [vmem:[#allocation2 + $0x30] sm:$0xff]   ;;  %s1512_s18 = scalar_lea.hbm %s1565_s8, %s917_s26  ;;  %p1177_p10 = scmp.ne.s32.totalorder %s1514_s12, %s1176_s9 }
  0x57   : > { %954 = vmatprep.subr.bf16.mxu0 %v1252_v0  ;;  %974 = vmatprep.subr.bf16.mxu1 %v1252_v0  ;;  %v1107_v33 = vld [vmem:[#allocation2 + $0x38] sm:$0xff]   ;;  %v1108_v34 = vld [vmem:[#allocation5] sm:$0xff]   ;;  %v1109_v35 = vld [vmem:[#allocation5 + $0x8] sm:$0xff]   ;;  %s1254_s14 = smov [#allocation7]  }
  0x58   : > { %v1110_v36 = vld [vmem:[#allocation5 + $0x10] sm:$0xff]   ;;  %v1111_v37 = vld [vmem:[#allocation5 + $0x18] sm:$0xff]   ;;  %v1112_v38 = vld [vmem:[#allocation5 + $0x20] sm:$0xff]   ;;  %p1178_p2 = pnand %p1177_p10, %p1581_p1  ;;  %s1180_s20 = sshll.u32 %s1254_s14, 4  ;;  %s1181_s20 = int_to_ptr.vmem [resolvable:$false] %s1180_s20 }
  0x59   : > { %v1113_v39 = vld [vmem:[#allocation5 + $0x28] sm:$0xff]   ;;  %v889_v40 = vld [vmem:[%s1561_s4] ss:$0 sm:$0xff]  ;;  %v1114_v50 = vld [vmem:[#allocation5 + $0x30] sm:$0xff]   ;;  %s1182_s22 = scalar_lea.vmem %s1181_s20, 512  ;;  %p1183_p4 = scmp.lt.s32.totalorder %s1514_s12, %s1181_s20 }
  0x5a   : > { %955 = vmatpush3.bf16.msra.mxu0 %v1090_v3  ;;  %975 = vmatpush3.bf16.msra.mxu1 %v1098_v14  ;;  %v1115_v51 = vld [vmem:[#allocation5 + $0x38] sm:$0xff]   ;;  %v895_v52 = vld [vmem:[%s1563_s6] ss:$0 sm:$0xff]  ;;  %p1179_p3 = pneg %p1178_p2  ;;  %p1184_p7 = scmp.lt.s32.totalorder %s1182_s22, %s1176_s9 }
  0x5b   : > { %956 = vmatprep.subr.bf16.mxu0 %v1252_v0  ;;  %976 = vmatprep.subr.bf16.mxu1 %v1252_v0 }
  0x5c   : > { %p1185_p8 = por %p1184_p7, %p1183_p4 }
  0x5e   : > { %957 = vmatpush3.bf16.msra.mxu0 %v1091_v5  ;;  %977 = vmatpush3.bf16.msra.mxu1 %v1099_v15  ;;  %p1186_p11 = pnand %p1185_p8, %p1179_p3 }
  0x5f   : > { %958 = vmatprep.subr.bf16.mxu0 %v1252_v0  ;;  %982 = vmatprep.subr.bf16.mxu1 %v1252_v0 }
  0x62   : > { %959 = vmatpush3.bf16.msra.mxu0 %v1092_v7 }
  0x63   : > { %960 = vmatprep.subr.bf16.mxu0 %v1252_v0 }
  0x66   : > { %961 = vmatpush3.bf16.msra.mxu0 %v1093_v8 }
  0x67   : > { %962 = vmatprep.subr.bf16.mxu0 %v1252_v0 }
  0x6a   : > { %963 = vmatpush3.bf16.msra.mxu0 %v1094_v9 }
  0x6b   : > { %964 = vmatprep.subr.bf16.mxu0 %v1252_v0 }
  0x6e   : > { %965 = vmatpush3.bf16.msra.mxu0 %v1095_v10 }
  0x6f   : > { %1002 = vmatprep.subr.bf16.mxu0 %v1252_v0 }
  0x71   : > { %967 = vmatmul.mubr.bf16.vlgmr.msra.gmra.mrb[0].mxu0 %v340_v13 }
  0x72   : > { %1018 = vmatprep.mubr.msk.bf16.mxu0 %vm1253_vm0, %v1252_v0  ;;  %1003 = vmatpush3.bf16.msra.mxu0 %v1108_v34 }
  0x73   : > { %1004 = vmatprep.subr.bf16.mxu0 %v1252_v0 }
  0x76   : > { %1005 = vmatpush3.bf16.msra.mxu0 %v1109_v35 }
  0x77   : > { %1006 = vmatprep.subr.bf16.mxu0 %v1252_v0 }
  0x7a   : > { %1007 = vmatpush3.bf16.msra.mxu0 %v1110_v36 }
  0x7b   : > { %1008 = vmatprep.subr.bf16.mxu0 %v1252_v0 }
  0x7e   : > { %1009 = vmatpush3.bf16.msra.mxu0 %v1111_v37 }
  0x7f   : > { %1010 = vmatprep.subr.bf16.mxu0 %v1252_v0 }
  0x82   : > { %1011 = vmatpush3.bf16.msra.mxu0 %v1112_v38 }
  0x83   : > { %1012 = vmatprep.subr.bf16.mxu0 %v1252_v0 }
  0x86   : > { %1013 = vmatpush3.bf16.msra.mxu0 %v1113_v39 }
  0x87   : > { %1014 = vmatprep.subr.bf16.mxu0 %v1252_v0 }
  0x8a   : > { %1015 = vmatpush3.bf16.msra.mxu0 %v1114_v50 }
  0x8b   : > { %1016 = vmatprep.subr.bf16.mxu0 %v1252_v0 }
  0x8e   : > { %1017 = vmatpush3.bf16.msra.mxu0 %v1115_v51 }
 0x144   : > { %v446_v17 = vpop.f32.mrb[0].mxu0 }
 0x145   : > { %v447_v18 = vadd.f32 %v880_v16, %v446_v17  ;;  %v968_v19 = vpop.f32.mrb[1].mxu0 }
 0x146   : > { %v449_v20 = vpop.f32.mrb[2].mxu0 }
 0x147   : > { %v450_v21 = vadd.f32 %v880_v16, %v449_v20  ;;  %v969_v22 = vpop.f32.mrb[3].mxu0  ;;  %v453_v23 = vmax.f32 %v447_v18, 0.0 }
 0x149   : > { %v454_v24 = vmax.f32 %v450_v21, 0.0 }
 0x14b   : > { %v455_v26 = vpack.c.bf16 %v454_v24, %v453_v23 }
 0x14d   : > { %979 = vmatmul.mubr.msk.bf16.vlgmr.msra.gmra.mrb[0].mxu1 %vm495_vm1, %v455_v26 }
 0x14e   : > { %983 = vmatpush3.bf16.msra.mxu1 %v1100_v25  ;;  %998 = vmatprep.mubr.msk.bf16.mxu1 %vm1253_vm0, %v1252_v0 }
 0x14f   : > { %984 = vmatprep.subr.bf16.mxu1 %v1252_v0 }
 0x152   : > { %985 = vmatpush3.bf16.msra.mxu1 %v1101_v27 }
 0x153   : > { %986 = vmatprep.subr.bf16.mxu1 %v1252_v0 }
 0x156   : > { %987 = vmatpush3.bf16.msra.mxu1 %v1102_v28 }
 0x157   : > { %988 = vmatprep.subr.bf16.mxu1 %v1252_v0 }
 0x15a   : > { %989 = vmatpush3.bf16.msra.mxu1 %v1103_v29 }
 0x15b   : > { %990 = vmatprep.subr.bf16.mxu1 %v1252_v0 }
 0x15e   : > { %991 = vmatpush3.bf16.msra.mxu1 %v1104_v30 }
 0x15f   : > { %992 = vmatprep.subr.bf16.mxu1 %v1252_v0 }
 0x162   : > { %993 = vmatpush3.bf16.msra.mxu1 %v1105_v31 }
 0x163   : > { %994 = vmatprep.subr.bf16.mxu1 %v1252_v0 }
 0x166   : > { %995 = vmatpush3.bf16.msra.mxu1 %v1106_v32 }
 0x167   : > { %996 = vmatprep.subr.bf16.mxu1 %v1252_v0 }
 0x16a   : > { %997 = vmatpush3.bf16.msra.mxu1 %v1107_v33 }
 0x220   : > { %v533_v41 = vpop.f32.mrb[0].mxu1 }
 0x221   : > { %v534_v42 = vadd.f32 %v889_v40, %v533_v41  ;;  %v980_v43 = vpop.f32.mrb[1].mxu1 }
 0x222   : > { %v536_v44 = vpop.f32.mrb[2].mxu1 }
 0x223   : > { %v537_v45 = vadd.f32 %v889_v40, %v536_v44  ;;  %v981_v46 = vpop.f32.mrb[3].mxu1  ;;  %v540_v47 = vmax.f32 %v534_v42, 0.0 }
 0x225   : > { %v541_v48 = vmax.f32 %v537_v45, 0.0 }
 0x227   : > { %v542_v49 = vpack.c.bf16 %v541_v48, %v540_v47 }
 0x229   : > { %999 = vmatmul.mubr.bf16.vlgmr.msra.gmra.mrb[4].mxu1 %v542_v49 }
 0x2fc   : > { %v648_v53 = vpop.f32.mrb[4].mxu1 }
 0x2fd   : > { %v649_v54 = vadd.f32 %v895_v52, %v648_v53  ;;  %v1000_v55 = vpop.f32.mrb[5].mxu1 }
 0x2fe   : > { %v651_v56 = vpop.f32.mrb[6].mxu1 }
 0x2ff   : > { %v652_v57 = vadd.f32 %v895_v52, %v651_v56  ;;  %v1001_v58 = vpop.f32.mrb[7].mxu1  ;;  %v655_v59 = vmul.f32 %v649_v54, %v649_v54 }
 0x301   : > { %v656_v60 = vmul.f32 %v652_v57, %v652_v57 }
 0x303   : > { %v657_v61 = vpack.c.bf16 %v656_v60, %v655_v59 }
 0x305   : > { %1019 = vmatmul.mubr.bf16.vlgmr.msra.gmra.mrb[4].mxu0 %v657_v61 }
 0x3d8   : > { %v756_v62 = vpop.f32.mrb[4].mxu0 }
 0x3d9   : > { %v763_v63 = vmax.f32 %v756_v62, 1e-24  ;;  %v1020_v0 = vpop.f32.mrb[5].mxu0 }
 0x3da   : > { %v759_v1 = vpop.f32.mrb[6].mxu0 }
 0x3db   : > { %1116 = vrsqrt.f32 %v763_v63  ;;  %v764_v2 = vmax.f32 %v759_v1, 1e-24  ;;  %v1021_v3 = vpop.f32.mrb[7].mxu0 }
 0x3dd   : > { %1118 = vrsqrt.f32 %v764_v2 }
 0x3e5   : > { %v1117_v4 = vpop.eup %1116 }
 0x3e6   : > { %v767_v5 = vmul.f32 %v1117_v4, %v649_v54 }
 0x3e7   : > { %v1119_v6 = vpop.eup %1118 }
 0x3e8   : > { %v768_v7 = vmul.f32 %v1119_v6, %v652_v57  ;;  %769 = vst [vmem:[%s329_s10] sm:$0xff] %v767_v5 }
 0x3ea   : > { %770 = vst [vmem:[%s329_s10 + $0x8] sm:$0xff] %v768_v7 }
 0x3eb   : > { %1189 = shalt.err (!%p1186_p11)
}
 0x3ec   : > { %s1190_s21 = scalar_lea.hbm %s1512_s18, 256  ;;  %s1194_s24 = scalar_lea.hbm %s1565_s8, 1024 }
 0x3ed   : > { %p1191_p13 = scmp.ne.s32.totalorder %s1512_s18, %s1190_s21  ;;  %p1195_p6 = scmp.lt.u32.totalorder %s1512_s18, %s1565_s8 }
 0x3ee   : > { %p1196_p9 = scmp.lt.u32.totalorder %s1194_s24, %s1190_s21  ;;  %p1198_p10 = scmp.lt.u32.totalorder %s1190_s21, %s1512_s18 }
 0x3ef   : > { %p1192_p5 = pnand %p1191_p13, %p1581_p1 }
 0x3f0   : > { %p1197_p12 = por %p1196_p9, %p1195_p6 }
 0x3f1   : > { %p1193_p0 = pneg %p1192_p5 }
 0x3f2   : > { %p1199_p2 = por %p1198_p10, %p1197_p12 }
 0x3f4   : > { %p1200_p3 = pnand %p1199_p2, %p1193_p0 }
 0x3f6   : > { %1203 = shalt.err (!%p1200_p3)
}
 0x3f7   : > { %s1255_s10 = smov 128   ;;  %s1256_s13 = smov 8  }
 0x3f8   : > { %1030 = dma.vmem_to_hbm [thread:$0]  (%p1581_p1), %s1514_s12, 256, %s1512_s18, %s1516_s29, %s1255_s10, %s1255_s10, %s1256_s13  }
 0x3f9 PF: > { %p1047_p4 = scmp.ge.s32.totalorder %s1246_s30, 2  ;;  %s800_s19 = sand.u32 1, %s1234_s27  }
 0x3fa   : > { %p1582_p7 = scmp.ne.s32.totalorder %s1573_s16, 0  ;;  %s801_s9 = scalar_lea.sflag [#allocation4], %s800_s19 }
 0x3fc   : > { %p1040_p8 = pnand %p1047_p4, %p1582_p7 }
 0x3fe   : > { %1229 = dma.done.wait (!%p1040_p8), %s801_s9, 256  }
 0x3ff   : > { %1231 = vsyncadd (!%p1040_p8), %s801_s9, 4294967040  ;;  %s1583_s14 = sld [smem:[#allocation11_spill]]  ;;  %s1584_s29 = sld [smem:[#allocation12_spill]] }
 0x400   : > { %p20_p11 = scmp.ge.s32.totalorder %s1327_s11, 6   ;;  %s1585_s27 = smov %s1238_s28 }
 0x401   : > { %s1587_s30 = smov %s1327_s11 }
 0x402   :  { %22 = sbr.rel (!%p20_p11) target bundleno = 5 (0x5), region = 96 }
 0x405   : > { %s1586_s28 = smov %s1583_s14 }
 0x409   :  { %806 = vsyncpa [#allocation3], 1 }
 0x40a   :  { %808 = vsyncpa [#allocation3 + $0x1], 1 }
 0x40b   :  { %809 = vsyncpa [#allocation6], 1 }
 0x40c   :  { %810 = vsyncpa [#allocation4], 1 }
 0x40d   :  { %812 = vsyncpa [#allocation4 + $0x1], 1 }

</bundles_post_ra>
